<compile_context>
chip_gen: v5e
topology: v5e:2x2
jax: 0.10.0
libtpu: 0.0.40
codegen_flags: <defaults>
</compile_context>

<pallas_src>
import math

import jax
import jax.numpy as jnp
from jax.experimental import pallas as pl
from jax.experimental.pallas import tpu as pltpu

D_IN = 122   # feature width (no padding anywhere)
D_H1 = 40
D_Z = 5


def _round_up(v, m):
    return ((v + m - 1) // m) * m


def _gelu_exact(x):
    # nn.GELU() default = exact erf formulation.
    return 0.5 * x * (1.0 + jax.lax.erf(x * (1.0 / math.sqrt(2.0))))


def autoencoder_kernel(
    x_ref,
    w1_ref, b1_ref,
    w2_ref, b2_ref,
    w3_ref, b3_ref,
    w4_ref, b4_ref,
    out_ref,
):
    x = x_ref[...]                                                       # (TB, 122)

    # --- encoder ---
    h = jnp.dot(x, w1_ref[...], preferred_element_type=jnp.float32) + b1_ref[...]
    h = _gelu_exact(h)                                                   # (TB, 40)
    z = jnp.dot(h, w2_ref[...], preferred_element_type=jnp.float32) + b2_ref[...]
    z = jax.nn.sigmoid(z)                                                # (TB, 5)

    # --- decoder ---
    h2 = jnp.dot(z, w3_ref[...], preferred_element_type=jnp.float32) + b3_ref[...]
    h2 = _gelu_exact(h2)                                                 # (TB, 40)
    y = jnp.dot(h2, w4_ref[...], preferred_element_type=jnp.float32) + b4_ref[...]
    out_ref[...] = jax.nn.sigmoid(y)                                     # (TB, 122)


def autoencoder_forward(x, params, *, tile_b=4096):
    """x: (N, 122) float32. Returns (N, 122) float32."""
    n, d = x.shape
    assert d == D_IN
    x = x.astype(jnp.float32)
    w1, b1, w2, b2, w3, b3, w4, b4 = params

    # --- batch tile selection ------------------------------------------------
    # Multiple of 8 (sublane).  Aim for >= ~4 grid steps so the "parallel"
    # batch axis shards across v7x's 2 TensorCores and the x/out DMAs
    # double-buffer against compute; cap at the caller's tile_b (default 4096,
    # ~14 MiB per-step VMEM incl. lane-padded intermediates).
    n_up8 = _round_up(max(n, 1), 8)
    tile_cap = max(8, _round_up(-(-n_up8 // 4), 8))          # ~N/4 rows per step
    tile_b = max(8, min(int(tile_b), tile_cap))
    tile_b = _round_up(tile_b, 8)
    grid = (int(pl.cdiv(n, tile_b)),)                        # ragged last tile OK

    # --- VMEM limit (only matters for big tiles on v5e's 16 MiB default) -----
    # x + out double-buffered (f32, 122 lanes) + h/z/h2 intermediates
    # (lane-padded to 128 in vregs/VMEM).
    est_vmem = tile_b * (4 * D_IN * 4 + 3 * 128 * 4) + (1 << 16)
    vmem_limit = None
    if est_vmem > (12 << 20):
        vmem_limit = min(64 << 20, max(32 << 20, 2 * est_vmem))

    full = lambda shape: pl.BlockSpec(shape, lambda i: (0, 0))

    flops = 2 * n * (D_IN * D_H1 + D_H1 * D_Z + D_Z * D_H1 + D_H1 * D_IN)
    transcendentals = n * (D_H1 + D_Z + D_H1 + D_IN)
    weight_bytes = 4 * (D_IN * D_H1 + D_H1 + D_H1 * D_Z + D_Z
                        + D_Z * D_H1 + D_H1 + D_H1 * D_IN + D_IN)
    bytes_accessed = 2 * n * D_IN * 4 + weight_bytes

    # TODO(synk): optional bf16 I/O (halves HBM traffic, changes numerics) and
    # pipeline_mode=pl.Buffered(3) on the x spec if a trace shows exposed DMA.
    return pl.pallas_call(
        autoencoder_kernel,
        out_shape=jax.ShapeDtypeStruct((n, D_IN), jnp.float32),
        grid=grid,
        in_specs=[
            pl.BlockSpec((tile_b, D_IN), lambda i: (i, 0)),   # x: batch-tiled
            full(w1.shape), full(b1.shape),                   # weights: VMEM-resident
            full(w2.shape), full(b2.shape),
            full(w3.shape), full(b3.shape),
            full(w4.shape), full(b4.shape),
        ],
        out_specs=pl.BlockSpec((tile_b, D_IN), lambda i: (i, 0)),
        compiler_params=pltpu.CompilerParams(
            dimension_semantics=("parallel",),
            vmem_limit_bytes=vmem_limit,
        ),
        cost_estimate=pl.CostEstimate(
            flops=flops,
            transcendentals=transcendentals,
            bytes_accessed=bytes_accessed,
        ),
    )(x, w1, b1, w2, b2, w3, b3, w4, b4)


def init_params(key):
    """Deterministic parameter init (weights stored (in, out)).

    The two xavier_uniform_ layers of the original module use Glorot-uniform;
    the rest use PyTorch's default kaiming-uniform (bound = 1/sqrt(fan_in)).
    Biases: uniform(-1/sqrt(fan_in), 1/sqrt(fan_in)) as in PyTorch defaults.
    """
    keys = jax.random.split(key, 8)

    def kaiming_w(k, fan_in, fan_out):
        bound = 1.0 / math.sqrt(fan_in)
        return jax.random.uniform(k, (fan_in, fan_out), jnp.float32, -bound, bound)

    def xavier_w(k, fan_in, fan_out):
        bound = math.sqrt(6.0 / (fan_in + fan_out))
        return jax.random.uniform(k, (fan_in, fan_out), jnp.float32, -bound, bound)

    def bias(k, fan_in, fan_out):
        bound = 1.0 / math.sqrt(fan_in)
        return jax.random.uniform(k, (1, fan_out), jnp.float32, -bound, bound)

    w1 = kaiming_w(keys[0], D_IN, D_H1)   # Linear(122, 40)
    b1 = bias(keys[1], D_IN, D_H1)
    w2 = xavier_w(keys[2], D_H1, D_Z)     # Linear(40, 5)   (xavier_uniform_)
    b2 = bias(keys[3], D_H1, D_Z)
    w3 = kaiming_w(keys[4], D_Z, D_H1)    # Linear(5, 40)
    b3 = bias(keys[5], D_Z, D_H1)
    w4 = xavier_w(keys[6], D_H1, D_IN)    # Linear(40, 122) (xavier_uniform_)
    b4 = bias(keys[7], D_H1, D_IN)
    return (w1, b1, w2, b2, w3, b3, w4, b4)


def reference_forward(x, params):
    """Pure-JAX reference for correctness checking."""
    w1, b1, w2, b2, w3, b3, w4, b4 = params
    h = _gelu_exact(x @ w1 + b1)
    z = jax.nn.sigmoid(h @ w2 + b2)
    h2 = _gelu_exact(z @ w3 + b3)
    return jax.nn.sigmoid(h2 @ w4 + b4)


if __name__ == "__main__":
    key = jax.random.PRNGKey(0)
    k_param, k_data = jax.random.split(key)

    params = init_params(k_param)

    # Inputs are MinMax-scaled to [0, 1] in the original pipeline.
    # Case 1: small aligned batch -> single grid step, exact block.
    x_small = jax.random.uniform(k_data, (8, D_IN), jnp.float32, 0.0, 1.0)
    out_small = jax.block_until_ready(autoencoder_forward(x_small, params))
    ref_small = reference_forward(x_small, params)
    assert out_small.shape == (8, D_IN)
    assert bool(jnp.all(jnp.isfinite(out_small)))
    assert jnp.allclose(out_small, ref_small, atol=1e-5, rtol=1e-5)

    # Case 2: ragged batch (13 rows, adaptive tile_b=8) -> 2 grid steps with a
    # partial, masked last tile; no wrapper-side pad or slice involved.
    x_odd = jax.random.uniform(jax.random.PRNGKey(1), (13, D_IN), jnp.float32, 0.0, 1.0)
    out_odd = jax.block_until_ready(autoencoder_forward(x_odd, params))
    ref_odd = reference_forward(x_odd, params)
    assert out_odd.shape == (13, D_IN)
    assert bool(jnp.all(jnp.isfinite(out_odd)))
    assert jnp.allclose(out_odd, ref_odd, atol=1e-5, rtol=1e-5)

    print("KERNEL_OK")
</pallas_src>

<mosaic_0001>
module attributes {stable_mosaic.version = 11 : i64} {
  func.func @autoencoder_kernel(%arg0: i32, %arg1: memref<8x122xf32, #tpu.memory_space<vmem>>, %arg2: memref<122x40xf32, #tpu.memory_space<vmem>>, %arg3: memref<1x40xf32, #tpu.memory_space<vmem>>, %arg4: memref<40x5xf32, #tpu.memory_space<vmem>>, %arg5: memref<1x5xf32, #tpu.memory_space<vmem>>, %arg6: memref<5x40xf32, #tpu.memory_space<vmem>>, %arg7: memref<1x40xf32, #tpu.memory_space<vmem>>, %arg8: memref<40x122xf32, #tpu.memory_space<vmem>>, %arg9: memref<1x122xf32, #tpu.memory_space<vmem>>, %arg10: memref<8x122xf32, #tpu.memory_space<vmem>>) attributes {dimension_semantics = [#tpu.dimension_semantics<parallel>], iteration_bounds = array<i64: 1>, scalar_prefetch = 0 : i64, scratch_operands = 0 : i64, tpu.core_type = #tpu.core_type<tc>, window_params = [{transform_indices = @transform_0, window_bounds = array<i64: 8, 122>}, {pipeline_mode = #tpu.pipeline_mode<synchronous>, transform_indices = @transform_1, window_bounds = array<i64: 122, 40>}, {pipeline_mode = #tpu.pipeline_mode<synchronous>, transform_indices = @transform_2, window_bounds = array<i64: 1, 40>}, {pipeline_mode = #tpu.pipeline_mode<synchronous>, transform_indices = @transform_3, window_bounds = array<i64: 40, 5>}, {pipeline_mode = #tpu.pipeline_mode<synchronous>, transform_indices = @transform_4, window_bounds = array<i64: 1, 5>}, {pipeline_mode = #tpu.pipeline_mode<synchronous>, transform_indices = @transform_5, window_bounds = array<i64: 5, 40>}, {pipeline_mode = #tpu.pipeline_mode<synchronous>, transform_indices = @transform_6, window_bounds = array<i64: 1, 40>}, {pipeline_mode = #tpu.pipeline_mode<synchronous>, transform_indices = @transform_7, window_bounds = array<i64: 40, 122>}, {pipeline_mode = #tpu.pipeline_mode<synchronous>, transform_indices = @transform_8, window_bounds = array<i64: 1, 122>}, {transform_indices = @transform_9, window_bounds = array<i64: 8, 122>}]} {
    %c0 = arith.constant 0 : index
    %c0_0 = arith.constant 0 : index
    %0 = vector.load %arg1[%c0, %c0_0] : memref<8x122xf32, #tpu.memory_space<vmem>>, vector<8x122xf32>
    %c0_1 = arith.constant 0 : index
    %c0_2 = arith.constant 0 : index
    %1 = vector.load %arg2[%c0_1, %c0_2] : memref<122x40xf32, #tpu.memory_space<vmem>>, vector<122x40xf32>
    %cst = arith.constant dense<0.000000e+00> : vector<8x40xf32>
    %2 = tpu.matmul %0, %1, %cst {dimension_numbers = #tpu.dot_dimension_numbers<[1], [0], [0], [1], [0, 0, 1, 1], [], []>} : vector<8x122xf32>, vector<122x40xf32>, vector<8x40xf32> -> vector<8x40xf32>
    %c0_3 = arith.constant 0 : index
    %c0_4 = arith.constant 0 : index
    %3 = vector.load %arg3[%c0_3, %c0_4] : memref<1x40xf32, #tpu.memory_space<vmem>>, vector<1x40xf32>
    %4 = vector.broadcast %3 : vector<1x40xf32> to vector<8x40xf32>
    %5 = arith.addf %2, %4 : vector<8x40xf32>
    %cst_5 = arith.constant 5.000000e-01 : f32
    %6 = vector.broadcast %cst_5 : f32 to vector<8x40xf32>
    %7 = arith.mulf %6, %5 : vector<8x40xf32>
    %cst_6 = arith.constant 0.707106769 : f32
    %8 = vector.broadcast %cst_6 : f32 to vector<8x40xf32>
    %9 = arith.mulf %5, %8 : vector<8x40xf32>
    %10 = math.erf %9 : vector<8x40xf32>
    %cst_7 = arith.constant 1.000000e+00 : f32
    %11 = vector.broadcast %cst_7 : f32 to vector<8x40xf32>
    %12 = arith.addf %11, %10 : vector<8x40xf32>
    %13 = arith.mulf %7, %12 : vector<8x40xf32>
    %c0_8 = arith.constant 0 : index
    %c0_9 = arith.constant 0 : index
    %14 = vector.load %arg4[%c0_8, %c0_9] : memref<40x5xf32, #tpu.memory_space<vmem>>, vector<40x5xf32>
    %cst_10 = arith.constant dense<0.000000e+00> : vector<8x5xf32>
    %15 = tpu.matmul %13, %14, %cst_10 {dimension_numbers = #tpu.dot_dimension_numbers<[1], [0], [0], [1], [0, 0, 1, 1], [], []>} : vector<8x40xf32>, vector<40x5xf32>, vector<8x5xf32> -> vector<8x5xf32>
    %c0_11 = arith.constant 0 : index
    %c0_12 = arith.constant 0 : index
    %16 = vector.load %arg5[%c0_11, %c0_12] : memref<1x5xf32, #tpu.memory_space<vmem>>, vector<1x5xf32>
    %17 = vector.broadcast %16 : vector<1x5xf32> to vector<8x5xf32>
    %18 = arith.addf %15, %17 : vector<8x5xf32>
    %19 = arith.negf %18 : vector<8x5xf32>
    %20 = math.exp %19 : vector<8x5xf32>
    %cst_13 = arith.constant 1.000000e+00 : f32
    %21 = vector.broadcast %cst_13 : f32 to vector<8x5xf32>
    %22 = arith.addf %21, %20 : vector<8x5xf32>
    %23 = arith.divf %21, %22 : vector<8x5xf32>
    %c0_14 = arith.constant 0 : index
    %c0_15 = arith.constant 0 : index
    %24 = vector.load %arg6[%c0_14, %c0_15] : memref<5x40xf32, #tpu.memory_space<vmem>>, vector<5x40xf32>
    %cst_16 = arith.constant dense<0.000000e+00> : vector<8x40xf32>
    %25 = tpu.matmul %23, %24, %cst_16 {dimension_numbers = #tpu.dot_dimension_numbers<[1], [0], [0], [1], [0, 0, 1, 1], [], []>} : vector<8x5xf32>, vector<5x40xf32>, vector<8x40xf32> -> vector<8x40xf32>
    %c0_17 = arith.constant 0 : index
    %c0_18 = arith.constant 0 : index
    %26 = vector.load %arg7[%c0_17, %c0_18] : memref<1x40xf32, #tpu.memory_space<vmem>>, vector<1x40xf32>
    %27 = vector.broadcast %26 : vector<1x40xf32> to vector<8x40xf32>
    %28 = arith.addf %25, %27 : vector<8x40xf32>
    %cst_19 = arith.constant 5.000000e-01 : f32
    %29 = vector.broadcast %cst_19 : f32 to vector<8x40xf32>
    %30 = arith.mulf %29, %28 : vector<8x40xf32>
    %cst_20 = arith.constant 0.707106769 : f32
    %31 = vector.broadcast %cst_20 : f32 to vector<8x40xf32>
    %32 = arith.mulf %28, %31 : vector<8x40xf32>
    %33 = math.erf %32 : vector<8x40xf32>
    %cst_21 = arith.constant 1.000000e+00 : f32
    %34 = vector.broadcast %cst_21 : f32 to vector<8x40xf32>
    %35 = arith.addf %34, %33 : vector<8x40xf32>
    %36 = arith.mulf %30, %35 : vector<8x40xf32>
    %c0_22 = arith.constant 0 : index
    %c0_23 = arith.constant 0 : index
    %37 = vector.load %arg8[%c0_22, %c0_23] : memref<40x122xf32, #tpu.memory_space<vmem>>, vector<40x122xf32>
    %cst_24 = arith.constant dense<0.000000e+00> : vector<8x122xf32>
    %38 = tpu.matmul %36, %37, %cst_24 {dimension_numbers = #tpu.dot_dimension_numbers<[1], [0], [0], [1], [0, 0, 1, 1], [], []>} : vector<8x40xf32>, vector<40x122xf32>, vector<8x122xf32> -> vector<8x122xf32>
    %c0_25 = arith.constant 0 : index
    %c0_26 = arith.constant 0 : index
    %39 = vector.load %arg9[%c0_25, %c0_26] : memref<1x122xf32, #tpu.memory_space<vmem>>, vector<1x122xf32>
    %40 = vector.broadcast %39 : vector<1x122xf32> to vector<8x122xf32>
    %41 = arith.addf %38, %40 : vector<8x122xf32>
    %42 = arith.negf %41 : vector<8x122xf32>
    %43 = math.exp %42 : vector<8x122xf32>
    %cst_27 = arith.constant 1.000000e+00 : f32
    %44 = vector.broadcast %cst_27 : f32 to vector<8x122xf32>
    %45 = arith.addf %44, %43 : vector<8x122xf32>
    %46 = arith.divf %44, %45 : vector<8x122xf32>
    %c0_28 = arith.constant 0 : index
    %c0_29 = arith.constant 0 : index
    %47 = vector.load %arg10[%c0_28, %c0_29] : memref<8x122xf32, #tpu.memory_space<vmem>>, vector<8x122xf32>
    tpu.vector_store %arg10[%c0_28, %c0_29], %46 {strides = array<i32>} : memref<8x122xf32, #tpu.memory_space<vmem>>, vector<8x122xf32>,
    return
  }
  func.func @transform_0(%arg0: i32) -> (i32, i32) {
    %c0_i32 = arith.constant 0 : i32
    %c0_i32_0 = arith.constant 0 : i32
    return %arg0, %c0_i32 : i32, i32
  }
  func.func @transform_1(%arg0: i32) -> (i32, i32) {
    %c0_i32 = arith.constant 0 : i32
    %c0_i32_0 = arith.constant 0 : i32
    %c0_i32_1 = arith.constant 0 : i32
    return %c0_i32, %c0_i32_0 : i32, i32
  }
  func.func @transform_2(%arg0: i32) -> (i32, i32) {
    %c0_i32 = arith.constant 0 : i32
    %c0_i32_0 = arith.constant 0 : i32
    %c0_i32_1 = arith.constant 0 : i32
    return %c0_i32, %c0_i32_0 : i32, i32
  }
  func.func @transform_3(%arg0: i32) -> (i32, i32) {
    %c0_i32 = arith.constant 0 : i32
    %c0_i32_0 = arith.constant 0 : i32
    %c0_i32_1 = arith.constant 0 : i32
    return %c0_i32, %c0_i32_0 : i32, i32
  }
  func.func @transform_4(%arg0: i32) -> (i32, i32) {
    %c0_i32 = arith.constant 0 : i32
    %c0_i32_0 = arith.constant 0 : i32
    %c0_i32_1 = arith.constant 0 : i32
    return %c0_i32, %c0_i32_0 : i32, i32
  }
  func.func @transform_5(%arg0: i32) -> (i32, i32) {
    %c0_i32 = arith.constant 0 : i32
    %c0_i32_0 = arith.constant 0 : i32
    %c0_i32_1 = arith.constant 0 : i32
    return %c0_i32, %c0_i32_0 : i32, i32
  }
  func.func @transform_6(%arg0: i32) -> (i32, i32) {
    %c0_i32 = arith.constant 0 : i32
    %c0_i32_0 = arith.constant 0 : i32
    %c0_i32_1 = arith.constant 0 : i32
    return %c0_i32, %c0_i32_0 : i32, i32
  }
  func.func @transform_7(%arg0: i32) -> (i32, i32) {
    %c0_i32 = arith.constant 0 : i32
    %c0_i32_0 = arith.constant 0 : i32
    %c0_i32_1 = arith.constant 0 : i32
    return %c0_i32, %c0_i32_0 : i32, i32
  }
  func.func @transform_8(%arg0: i32) -> (i32, i32) {
    %c0_i32 = arith.constant 0 : i32
    %c0_i32_0 = arith.constant 0 : i32
    %c0_i32_1 = arith.constant 0 : i32
    return %c0_i32, %c0_i32_0 : i32, i32
  }
  func.func @transform_9(%arg0: i32) -> (i32, i32) {
    %c0_i32 = arith.constant 0 : i32
    %c0_i32_0 = arith.constant 0 : i32
    return %arg0, %c0_i32 : i32, i32
  }
}

</mosaic_0001>

<bundles_post_ra>
// kernel: tpu_custom_call.1
= control target key start
LH: loop header
LB: loop body
LE: loop exit
PB: predicated region body
PF: predicated region fallthrough
CT: control target
= control target key end

     0   :  { %vm58_vm0 = vcmask 1041408   ;;  %s530_s0 = inlined_call_operand.vmem [shape: f32[8,122], index: 0, kind: input, shape index: {}]   ;;  %s531_s1 = inlined_call_operand.vmem [shape: f32[122,40], index: 1, kind: input, shape index: {}]   ;;  %s532_s2 = inlined_call_operand.vmem [shape: f32[1,40], index: 2, kind: input, shape index: {}]   ;;  %s533_s3 = inlined_call_operand.vmem [shape: f32[40,5], index: 3, kind: input, shape index: {}]   ;;  %s534_s4 = inlined_call_operand.vmem [shape: f32[1,5], index: 4, kind: input, shape index: {}]   ;;  %s535_s5 = inlined_call_operand.vmem [shape: f32[5,40], index: 5, kind: input, shape index: {}]   ;;  %s536_s6 = inlined_call_operand.vmem [shape: f32[1,40], index: 6, kind: input, shape index: {}]   ;;  %s537_s7 = inlined_call_operand.vmem [shape: f32[40,122], index: 7, kind: input, shape index: {}]   ;;  %s538_s8 = inlined_call_operand.vmem [shape: f32[1,122], index: 8, kind: input, shape index: {}]   ;;  %s539_s9 = inlined_call_operand.hbm [shape: f32[8,122], index: 9, kind: output, shape index: {}]  }
   0x1   :  { %v49_v0 = vld [vmem:[%s531_s1 + $0x78] sm:$0x3]  ;;  %v48_v1 = vld [vmem:[%s531_s1 + $0x70] sm:$0xff]  ;;  %v47_v2 = vld [vmem:[%s531_s1 + $0x68] sm:$0xff] }
   0x2   :  { %323 = vmatpush.msk.msra.mxu0 %vm58_vm0, %v49_v0  ;;  %v46_v3 = vld [vmem:[%s531_s1 + $0x60] sm:$0xff]  ;;  %v45_v4 = vld [vmem:[%s531_s1 + $0x58] sm:$0xff] }
   0x4   :  { %63 = vmatpush.msra.mxu0 %v48_v1 }
   0x6   :  { %64 = vmatpush.msra.mxu0 %v47_v2 }
   0x8   :  { %65 = vmatpush.msra.mxu0 %v46_v3 }
   0x9   :  { %14 = vsyncpa [#allocation3], 0  ;;  %v44_v5 = vld [vmem:[%s531_s1 + $0x50] sm:$0xff]  ;;  %v43_v6 = vld [vmem:[%s531_s1 + $0x48] sm:$0xff]  ;;  %vm54_vm1 = vcmask 998400   ;;  %vm135_vm6 = vcmask 326656  }
   0xa   :  { %66 = vmatpush.msra.mxu0 %v45_v4  ;;  %v42_v7 = vld [vmem:[%s531_s1 + $0x40] sm:$0xff]  ;;  %v41_v8 = vld [vmem:[%s531_s1 + $0x38] sm:$0xff]  ;;  %v40_v9 = vld [vmem:[%s531_s1 + $0x30] sm:$0xff]  ;;  %vm187_vm7 = vcmask 1044480   ;;  %vm183_vm11 = vcmask 39936   ;;  %s376_s23 = smov [#allocation2]  }
   0xb   :  { %v39_v10 = vld [vmem:[%s531_s1 + $0x28] sm:$0xff]  ;;  %v38_v11 = vld [vmem:[%s531_s1 + $0x20] sm:$0xff]  ;;  %v37_v12 = vld [vmem:[%s531_s1 + $0x18] sm:$0xff] }
   0xc   :  { %67 = vmatpush.msra.mxu0 %v44_v5  ;;  %v36_v13 = vld [vmem:[%s531_s1 + $0x10] sm:$0xff]  ;;  %v35_v14 = vld [vmem:[%s531_s1 + $0x8] sm:$0xff]  ;;  %v34_v15 = vld [vmem:[%s531_s1] sm:$0xff] }
   0xd   :  { %v33_v16 = vld [vmem:[%s530_s0] sm:$0xff]  ;;  %v129_v30 = vld [vmem:[%s533_s3 + $0x18] sm:$0xff]  ;;  %v128_v32 = vld [vmem:[%s533_s3 + $0x10] sm:$0xff]  ;;  %s312_s0 = sshll.u32 %s376_s23, 4  ;;  %s313_s0 = int_to_ptr.vmem [resolvable:$true] %s312_s0 }
   0xe   :  { %68 = vmatpush.msra.mxu0 %v43_v6  ;;  %v334_v17 = vld [vmem:[%s532_s2] ss:$0 sm:$0xff]  ;;  %v127_v35 = vld [vmem:[%s533_s3 + $0x8] sm:$0xff] }
   0xf   :  { %v130_v29 = vld [vmem:[%s533_s3 + $0x20] sm:$0xff] }
  0x10   :  { %69 = vmatpush.msra.mxu0 %v42_v7  ;;  %150 = vmatpush.msra.mxu1 %v130_v29  ;;  %v126_v37 = vld [vmem:[%s533_s3] sm:$0xff] }
  0x11   :  { %v178_v0 = vld [vmem:[%s535_s5] sm:$0x1f] }
  0x12   :  { %70 = vmatpush.msra.mxu0 %v41_v8  ;;  %151 = vmatpush.msra.mxu1 %v129_v30  ;;  %v335_v1 = vld [vmem:[%s534_s4] ss:$0 sm:$0xff]  ;;  %v258_v30 = vld [vmem:[%s537_s7 + $0x18] sm:$0xff] }
  0x13   :  { %328 = vmatpush.msk.msra.mxu2 %vm187_vm7, %v178_v0  ;;  %v259_v29 = vld [vmem:[%s537_s7 + $0x20] sm:$0xff] }
  0x14   :  { %71 = vmatpush.msra.mxu0 %v40_v9  ;;  %152 = vmatpush.msra.mxu1 %v128_v32  ;;  %v257_v32 = vld [vmem:[%s537_s7 + $0x10] sm:$0xff]  ;;  %v337_v0 = vld [vmem:[%s538_s8] ss:$0 sm:$0xff]  ;;  %s314_s8 = sshll.u32 %s539_s9, 4  ;;  %s315_s8 = int_to_ptr.hbm [resolvable:$true] %s314_s8 }
  0x15   :  { %278 = vmatpush.msra.mxu3 %v259_v29 }
  0x16   :  { %72 = vmatpush.msra.mxu0 %v39_v10  ;;  %153 = vmatpush.msra.mxu1 %v127_v35  ;;  %v256_v35 = vld [vmem:[%s537_s7 + $0x8] sm:$0xff] }
  0x17   :  { %279 = vmatpush.msra.mxu3 %v258_v30 }
  0x18   :  { %73 = vmatpush.msra.mxu0 %v38_v11  ;;  %154 = vmatpush.msra.mxu1 %v126_v37  ;;  %v255_v37 = vld [vmem:[%s537_s7] sm:$0xff] }
  0x19   :  { %280 = vmatpush.msra.mxu3 %v257_v32 }
  0x1a   :  { %74 = vmatpush.msra.mxu0 %v37_v12 }
  0x1b   :  { %281 = vmatpush.msra.mxu3 %v256_v35 }
  0x1c   :  { %75 = vmatpush.msra.mxu0 %v36_v13 }
  0x1d   :  { %282 = vmatpush.msra.mxu3 %v255_v37 }
  0x1e   :  { %76 = vmatpush.msra.mxu0 %v35_v14 }
  0x20   :  { %77 = vmatpush.msra.mxu0 %v34_v15 }
  0x21   :  { %324 = vmatmul.msk.f32.vlgmr.msra.gmra.mxu0 %vm54_vm1, %v33_v16 }
  0x9e   :  { %v79_v18 = vpop.f32.mrf.mxu0 }
  0x9f   :  { %v80_v19 = vadd.f32 %v334_v17, %v79_v18  ;;  %v336_v17 = vld [vmem:[%s536_s6] ss:$0 sm:$0xff] }
  0xa1   :  { %v83_v20 = vmul.f32 0.70710677, %v80_v19  ;;  %v82_v61 = vmul.f32 0.5, %v80_v19 }
  0xa3   :  { %v84_v21 = vmul.f32 %v83_v20, %v83_v20 }
  0xa5   :  { %v85_v22 = vmin.f32 %v84_v21, 16.0 }
  0xa7   :  { %v86_v23 = vmul.f32 2.1237322e-06, %v85_v22  ;;  %v97_v24 = vmul.f32 3.8918573e-05, %v85_v22 }
  0xa9   :  { %v87_v25 = vadd.f32 0.00028619796, %v86_v23  ;;  %v98_v26 = vadd.f32 0.001143296, %v97_v24 }
  0xab   :  { %v88_v27 = vmul.f32 %v87_v25, %v85_v22  ;;  %v99_v28 = vmul.f32 %v98_v26, %v85_v22 }
  0xad   :  { %v100_v31 = vadd.f32 0.014752088, %v99_v28  ;;  %v89_v33 = vadd.f32 0.0036580483, %v88_v27 }
  0xaf   :  { %v101_v34 = vmul.f32 %v100_v31, %v85_v22  ;;  %v90_v38 = vmul.f32 %v89_v33, %v85_v22 }
  0xb1   :  { %v102_v36 = vadd.f32 0.112945676, %v101_v34  ;;  %v91_v41 = vadd.f32 0.05243302, %v90_v38 }
  0xb3   :  { %v103_v39 = vmul.f32 %v102_v36, %v85_v22  ;;  %v92_v44 = vmul.f32 %v91_v41, %v85_v22 }
  0xb5   :  { %v104_v40 = vadd.f32 0.4994258, %v103_v39  ;;  %v93_v45 = vadd.f32 0.18741608, %v92_v44 }
  0xb7   :  { %v105_v42 = vmul.f32 %v104_v40, %v85_v22  ;;  %v94_v47 = vmul.f32 %v93_v45, %v85_v22 }
  0xb9   :  { %v106_v43 = vadd.f32 1.0, %v105_v42  ;;  %v95_v51 = vadd.f32 1.1283791, %v94_v47 }
  0xbb   :  { %338 = vrcp.f32 %v106_v43  ;;  %v118_v50 = vand.u32 2147483648, %v106_v43  ;;  %v116_v53 = vand.u32 2147483647, %v106_v43  ;;  %vm112_vm3 = vweird.f32 %v106_v43 }
  0xbc   :  { %v96_v56 = vmul.f32 %v95_v51, %v83_v20 }
  0xbd   :  { %v119_v55 = vor.u32 1.1754944e-38, %v118_v50  ;;  %vm117_vm5 = vcmp.eq.f32.partialorder %v116_v53, 8.507059e+37 }
  0xc1   :  { %v339_v46 = vpop.eup %338 }
  0xc2   :  { %v108_v48 = vmul.f32 %v339_v46, %v106_v43  ;;  %vm113_vm2 = vweird.f32 %v339_v46 }
  0xc3   :  { %vm114_vm4 = vmor %vm112_vm3, %vm113_vm2 }
  0xc4   :  { %v109_v49 = vsub.f32 1.0, %v108_v48 }
  0xc6   :  { %v110_v52 = vmul.f32 %v339_v46, %v109_v49 }
  0xc8   :  { %v111_v54 = vadd.f32 %v339_v46, %v110_v52 }
  0xca   :  { %v115_v57 = vsel %vm114_vm4, %v339_v46, %v111_v54 }
  0xcb   :  { %v120_v58 = vsel %vm117_vm5, %v119_v55, %v115_v57 }
  0xcc   :  { %v121_v59 = vmul.f32 %v120_v58, %v96_v56 }
  0xce   :  { %v325_v60 = vclamps-f32 %v121_v59, 1.0 }
  0xd0   :  { %v124_v62 = vadd.f32 1.0, %v325_v60 }
  0xd2   :  { %v125_v63 = vmul.f32 %v124_v62, %v82_v61 }
  0xd4   :  { %326 = vmatmul.msk.f32.vlgmr.msra.gmra.mxu1 %vm135_vm6, %v125_v63 }
 0x151   :  { %v156_v2 = vpop.f32.mrf.mxu1 }
 0x152   :  { %v157_v3 = vadd.f32 %v335_v1, %v156_v2 }
 0x154   :  { %v327_v4 = vmul.f32 -1.442695, %v157_v3 }
 0x156   :  { %340 = vpow2.f32 %v327_v4 }
 0x15c   :  { %v341_v5 = vpop.eup %340 }
 0x15d   :  { %v162_v6 = vadd.f32 1.0, %v341_v5 }
 0x15f   :  { %342 = vrcp.f32 %v162_v6  ;;  %v174_v10 = vand.u32 2147483648, %v162_v6  ;;  %v172_v12 = vand.u32 2147483647, %v162_v6  ;;  %vm168_vm9 = vweird.f32 %v162_v6 }
 0x161   :  { %v175_v14 = vor.u32 1.1754944e-38, %v174_v10  ;;  %vm173_vm12 = vcmp.eq.f32.partialorder %v172_v12, 8.507059e+37 }
 0x165   :  { %v343_v7 = vpop.eup %342 }
 0x166   :  { %v164_v8 = vmul.f32 %v343_v7, %v162_v6  ;;  %vm169_vm8 = vweird.f32 %v343_v7 }
 0x167   :  { %vm170_vm10 = vmor %vm168_vm9, %vm169_vm8 }
 0x168   :  { %v165_v9 = vsub.f32 1.0, %v164_v8 }
 0x16a   :  { %v166_v11 = vmul.f32 %v343_v7, %v165_v9 }
 0x16c   :  { %v167_v13 = vadd.f32 %v343_v7, %v166_v11 }
 0x16e   :  { %v171_v15 = vsel %vm170_vm10, %v343_v7, %v167_v13 }
 0x16f   :  { %v176_v16 = vsel %vm173_vm12, %v175_v14, %v171_v15 }
 0x170   :  { %329 = vmatmul.msk.f32.vlgmr.msra.gmra.mxu2 %vm183_vm11, %v176_v16 }
 0x1f3   :  { %v208_v18 = vpop.f32.mrf.mxu2 }
 0x1f4   :  { %v209_v19 = vadd.f32 %v336_v17, %v208_v18 }
 0x1f6   :  { %v212_v20 = vmul.f32 0.70710677, %v209_v19  ;;  %v211_v61 = vmul.f32 0.5, %v209_v19 }
 0x1f8   :  { %v213_v21 = vmul.f32 %v212_v20, %v212_v20 }
 0x1fa   :  { %v214_v22 = vmin.f32 %v213_v21, 16.0 }
 0x1fc   :  { %v215_v23 = vmul.f32 2.1237322e-06, %v214_v22  ;;  %v226_v24 = vmul.f32 3.8918573e-05, %v214_v22 }
 0x1fe   :  { %v216_v25 = vadd.f32 0.00028619796, %v215_v23  ;;  %v227_v26 = vadd.f32 0.001143296, %v226_v24 }
 0x200   :  { %v217_v27 = vmul.f32 %v216_v25, %v214_v22  ;;  %v228_v28 = vmul.f32 %v227_v26, %v214_v22 }
 0x202   :  { %v229_v31 = vadd.f32 0.014752088, %v228_v28  ;;  %v218_v33 = vadd.f32 0.0036580483, %v217_v27 }
 0x204   :  { %v230_v34 = vmul.f32 %v229_v31, %v214_v22  ;;  %v219_v38 = vmul.f32 %v218_v33, %v214_v22 }
 0x206   :  { %v231_v36 = vadd.f32 0.112945676, %v230_v34  ;;  %v220_v41 = vadd.f32 0.05243302, %v219_v38 }
 0x208   :  { %v232_v39 = vmul.f32 %v231_v36, %v214_v22  ;;  %v221_v44 = vmul.f32 %v220_v41, %v214_v22 }
 0x20a   :  { %v233_v40 = vadd.f32 0.4994258, %v232_v39  ;;  %v222_v45 = vadd.f32 0.18741608, %v221_v44 }
 0x20c   :  { %v234_v42 = vmul.f32 %v233_v40, %v214_v22  ;;  %v223_v47 = vmul.f32 %v222_v45, %v214_v22 }
 0x20e   :  { %v235_v43 = vadd.f32 1.0, %v234_v42  ;;  %v224_v51 = vadd.f32 1.1283791, %v223_v47 }
 0x210   :  { %344 = vrcp.f32 %v235_v43  ;;  %v247_v50 = vand.u32 2147483648, %v235_v43  ;;  %v245_v53 = vand.u32 2147483647, %v235_v43  ;;  %vm241_vm14 = vweird.f32 %v235_v43 }
 0x211   :  { %v225_v56 = vmul.f32 %v224_v51, %v212_v20 }
 0x212   :  { %v248_v55 = vor.u32 1.1754944e-38, %v247_v50  ;;  %vm246_vm0 = vcmp.eq.f32.partialorder %v245_v53, 8.507059e+37 }
 0x216   :  { %v345_v46 = vpop.eup %344 }
 0x217   :  { %v237_v48 = vmul.f32 %v345_v46, %v235_v43  ;;  %vm242_vm13 = vweird.f32 %v345_v46 }
 0x218   :  { %vm243_vm15 = vmor %vm241_vm14, %vm242_vm13 }
 0x219   :  { %v238_v49 = vsub.f32 1.0, %v237_v48 }
 0x21b   :  { %v239_v52 = vmul.f32 %v345_v46, %v238_v49 }
 0x21d   :  { %v240_v54 = vadd.f32 %v345_v46, %v239_v52 }
 0x21f   :  { %v244_v57 = vsel %vm243_vm15, %v345_v46, %v240_v54 }
 0x220   :  { %v249_v58 = vsel %vm246_vm0, %v248_v55, %v244_v57 }
 0x221   :  { %v250_v59 = vmul.f32 %v249_v58, %v225_v56 }
 0x223   :  { %v330_v60 = vclamps-f32 %v250_v59, 1.0 }
 0x225   :  { %v253_v62 = vadd.f32 1.0, %v330_v60 }
 0x227   :  { %v254_v63 = vmul.f32 %v253_v62, %v211_v61 }
 0x229   :  { %331 = vmatmul.msk.f32.vlgmr.msra.gmra.mxu3 %vm135_vm6, %v254_v63 }
 0x2ac   :  { %v284_v1 = vpop.f32.mrf.mxu3 }
 0x2ad   :  { %v285_v2 = vadd.f32 %v337_v0, %v284_v1 }
 0x2af   :  { %v332_v3 = vmul.f32 -1.442695, %v285_v2 }
 0x2b1   :  { %346 = vpow2.f32 %v332_v3 }
 0x2b7   :  { %v347_v4 = vpop.eup %346 }
 0x2b8   :  { %v290_v5 = vadd.f32 1.0, %v347_v4 }
 0x2ba   :  { %348 = vrcp.f32 %v290_v5  ;;  %v302_v9 = vand.u32 2147483648, %v290_v5  ;;  %v300_v11 = vand.u32 2147483647, %v290_v5  ;;  %vm296_vm3 = vweird.f32 %v290_v5 }
 0x2bc   :  { %v303_v13 = vor.u32 1.1754944e-38, %v302_v9  ;;  %vm301_vm5 = vcmp.eq.f32.partialorder %v300_v11, 8.507059e+37 }
 0x2c0   :  { %v349_v6 = vpop.eup %348 }
 0x2c1   :  { %v292_v7 = vmul.f32 %v349_v6, %v290_v5  ;;  %vm297_vm2 = vweird.f32 %v349_v6 }
 0x2c2   :  { %vm298_vm4 = vmor %vm296_vm3, %vm297_vm2 }
 0x2c3   :  { %v293_v8 = vsub.f32 1.0, %v292_v7 }
 0x2c5   :  { %v294_v10 = vmul.f32 %v349_v6, %v293_v8 }
 0x2c7   :  { %v295_v12 = vadd.f32 %v349_v6, %v294_v10 }
 0x2c9   :  { %v299_v14 = vsel %vm298_vm4, %v349_v6, %v295_v12 }
 0x2ca   :  { %v304_v15 = vsel %vm301_vm5, %v303_v13, %v299_v14 }
 0x2cb   :  { %306 = vst.msk [vmem:[#allocation2] sm:$0xff] %vm54_vm1, %v304_v15 }
 0x2cc   :  { %317 = dma.vmem_to_hbm [thread:$0]  %s313_s0, 128, %s315_s8, [#allocation3]  }
 0x2cd   :  { %374 = dma.done.wait [#allocation3], 128  }
 0x2ce   :  { %375 = vsyncadd [#allocation3], 4294967168 }
 0x2cf   :  { %322 = vsyncpa [#allocation3], 1 }

</bundles_post_ra>
